<compile_context>
chip_gen: v7x
topology: tpu7x:2x2x1
jax: 0.10.0
libtpu: 0.0.40
codegen_flags: <defaults>
</compile_context>

<pallas_src>
import jax
import jax.numpy as jnp
from jax.experimental import pallas as pl
from jax.experimental.pallas import tpu as pltpu


_VMEM_LIMIT_BYTES = 32 * 1024 * 1024  # explicit, safe on v5e/v6e/v7x


def _cdiv(a, b):
    return (a + b - 1) // b


def _round_up(a, b):
    return _cdiv(a, b) * b


# ----------------------------------------------------------------------------
# Pass 1 kernel: per-(folded-)channel sum of squares, accumulated over the
# point axis. Grid = (2 cores, steps). Each core owns one (8, Cf) output block
# (8 identical sublane copies so the block conforms to the (8, 128) tiling);
# init on the first step of the reduction axis via pl.when.
# ----------------------------------------------------------------------------
def _sumsq_kernel(x_ref, ss_ref):
    @pl.when(pl.program_id(1) == 0)
    def _():
        ss_ref[...] = jnp.zeros_like(ss_ref)

    x = x_ref[...].astype(jnp.float32)
    ss_ref[...] += jnp.sum(x * x, axis=0, keepdims=True)  # broadcast into (8, Cf)


# ----------------------------------------------------------------------------
# Pass 2 kernel: pure elementwise FMA. nx/gamma/beta are precomputed (1, Cf);
# no sqrt/mean/divide is recomputed per tile.
#   out = gamma * (x * nx) + beta + x
# ----------------------------------------------------------------------------
def _apply_kernel(nx_ref, gamma_ref, beta_ref, x_ref, o_ref):
    x = x_ref[...].astype(jnp.float32)
    out = gamma_ref[...] * (x * nx_ref[...]) + beta_ref[...] + x
    o_ref[...] = out.astype(o_ref.dtype)


# ----------------------------------------------------------------------------
# Fused single-kernel fast path for small problems (whole x resident in VMEM).
# ----------------------------------------------------------------------------
def _fused_kernel(gamma_ref, beta_ref, x_ref, o_ref):
    x = x_ref[...].astype(jnp.float32)
    ss = jnp.sum(x * x, axis=0, keepdims=True)                  # (1, C)
    gx = jnp.sqrt(ss)
    nx = gx / (jnp.mean(gx, axis=-1, keepdims=True) + 1e-6)     # (1, C)
    out = gamma_ref[...] * (x * nx) + beta_ref[...] + x
    o_ref[...] = out.astype(o_ref.dtype)


def minkowski_grn(x, gamma, beta, *, tile_n=1024,
                  fused_bytes=2 * 1024 * 1024, force_two_pass=False):
    """GRN forward on the (N, C) feature matrix. gamma/beta: (1, C) or (C,)."""
    N, C = x.shape
    gamma = jnp.asarray(gamma, jnp.float32).reshape(1, C)
    beta = jnp.asarray(beta, jnp.float32).reshape(1, C)

    # ------------------------------------------------------------------
    # Small-problem fast path: one fused kernel, one read of x from HBM.
    # ------------------------------------------------------------------
    if (not force_two_pass) and N * C * x.dtype.itemsize <= fused_bytes:
        return pl.pallas_call(
            _fused_kernel,
            out_shape=jax.ShapeDtypeStruct((N, C), x.dtype),
            grid_spec=pltpu.PrefetchScalarGridSpec(
                num_scalar_prefetch=0,
                grid=(1,),
                in_specs=[
                    pl.BlockSpec((1, C), lambda i: (0, 0)),   # gamma
                    pl.BlockSpec((1, C), lambda i: (0, 0)),   # beta
                    pl.BlockSpec((N, C), lambda i: (0, 0)),   # x (whole array)
                ],
                out_specs=pl.BlockSpec((N, C), lambda i: (0, 0)),
            ),
            compiler_params=pltpu.CompilerParams(
                dimension_semantics=("arbitrary",),
                vmem_limit_bytes=_VMEM_LIMIT_BYTES),
        )(gamma, beta, x)

    # ------------------------------------------------------------------
    # Two-pass tiled path.
    # ------------------------------------------------------------------
    # Lane-density folding: (N, C) -> (N/f, f*C) so the minor dim is >= 128.
    if C < 128 and 128 % C == 0:
        fold = 128 // C
    else:
        fold = 1
    Cf = fold * C

    nf_raw = _cdiv(N, fold)                                   # folded rows needed
    n_blocks = max(2, _round_up(_cdiv(nf_raw, tile_n), 2))    # even -> 2-way TC split
    tile_f = _round_up(_cdiv(nf_raw, n_blocks), 8)            # folded rows per block
    nf = n_blocks * tile_f                                    # padded folded rows
    n_pad = nf * fold                                         # padded original rows
    steps_per_core = n_blocks // 2

    x_pad = x
    if n_pad != N:
        # Zero rows are exact for the sum-of-squares; padded output rows are cropped.
        x_pad = jnp.pad(x, ((0, n_pad - N), (0, 0)))
    xf = x_pad.reshape(nf, Cf)

    # ---- Pass 1: per-channel sum of squares (split across 2 TensorCores). ----
    partials = pl.pallas_call(
        _sumsq_kernel,
        out_shape=jax.ShapeDtypeStruct((16, Cf), jnp.float32),   # 2 cores x 8 sublanes
        grid_spec=pltpu.PrefetchScalarGridSpec(
            num_scalar_prefetch=0,
            grid=(2, steps_per_core),
            in_specs=[pl.BlockSpec(
                (tile_f, Cf), lambda c, i: (c * steps_per_core + i, 0))],
            out_specs=pl.BlockSpec((8, Cf), lambda c, i: (c, 0)),
        ),
        compiler_params=pltpu.CompilerParams(
            dimension_semantics=("parallel", "arbitrary"),
            vmem_limit_bytes=_VMEM_LIMIT_BYTES),
    )(xf)

    # ---- Finalize nx once (tiny (1, C) math; not recomputed per pass-2 tile). ----
    ss_folded = partials[0] + partials[8]                       # (Cf,) combine cores
    ss = ss_folded.reshape(fold, C).sum(axis=0, keepdims=True)  # (1, C) unfold
    gx = jnp.sqrt(ss)
    nx = gx / (jnp.mean(gx, axis=-1, keepdims=True) + 1e-6)     # (1, C)
    nx_f = jnp.tile(nx, (1, fold)).astype(jnp.float32)          # (1, Cf)
    gamma_f = jnp.tile(gamma, (1, fold))
    beta_f = jnp.tile(beta, (1, fold))

    # ---- Pass 2: pure FMA apply, lane-dense (>=128-wide) loads and stores. ----
    out_f = pl.pallas_call(
        _apply_kernel,
        out_shape=jax.ShapeDtypeStruct((nf, Cf), x.dtype),
        grid_spec=pltpu.PrefetchScalarGridSpec(
            num_scalar_prefetch=0,
            grid=(n_blocks,),
            in_specs=[
                pl.BlockSpec((1, Cf), lambda i: (0, 0)),        # nx
                pl.BlockSpec((1, Cf), lambda i: (0, 0)),        # gamma
                pl.BlockSpec((1, Cf), lambda i: (0, 0)),        # beta
                pl.BlockSpec((tile_f, Cf), lambda i: (i, 0)),   # x (folded)
            ],
            out_specs=pl.BlockSpec((tile_f, Cf), lambda i: (i, 0)),
        ),
        compiler_params=pltpu.CompilerParams(
            dimension_semantics=("parallel",),
            vmem_limit_bytes=_VMEM_LIMIT_BYTES),
    )(nx_f, gamma_f, beta_f, xf)

    return out_f.reshape(n_pad, C)[:N]


def minkowski_grn_ref(x, gamma, beta):
    """Pure-JAX reference mirroring the PyTorch forward."""
    gx = jnp.linalg.norm(x, ord=2, axis=0, keepdims=True)            # (1, C)
    nx = gx / (jnp.mean(gx, axis=-1, keepdims=True) + 1e-6)          # (1, C)
    return gamma * (x * nx) + beta + x


if __name__ == "__main__":
    key = jax.random.PRNGKey(0)
    k_x1, k_x2, k_g, k_b = jax.random.split(key, 4)

    C = 64
    # Module __init__ uses zeros(1, dim); use small deterministic random values
    # so the full compute path is exercised.
    gamma = 0.1 * jax.random.normal(k_g, (1, C), dtype=jnp.float32)
    beta = 0.1 * jax.random.normal(k_b, (1, C), dtype=jnp.float32)

    # Case 1: small sparse batch -> fused single-kernel fast path.
    N1 = 256
    x1 = jax.random.normal(k_x1, (N1, C), dtype=jnp.float32)
    out1 = jax.block_until_ready(minkowski_grn(x1, gamma, beta))
    ref1 = minkowski_grn_ref(x1, gamma, beta)
    assert out1.shape == (N1, C) and out1.dtype == jnp.float32
    assert jnp.allclose(out1, ref1, atol=1e-4, rtol=1e-4), "fused path mismatch"

    # Case 2: force the tiled two-pass path (odd N exercises zero-padding and
    # the channel folding to a lane-dense 128-wide layout).
    N2 = 1001
    x2 = jax.random.normal(k_x2, (N2, C), dtype=jnp.float32)
    out2 = jax.block_until_ready(
        minkowski_grn(x2, gamma, beta, force_two_pass=True))
    ref2 = minkowski_grn_ref(x2, gamma, beta)
    assert out2.shape == (N2, C) and out2.dtype == jnp.float32
    assert jnp.allclose(out2, ref2, atol=1e-4, rtol=1e-4), "two-pass path mismatch"

    print("KERNEL_OK")
</pallas_src>

<mosaic_0001>
module attributes {stable_mosaic.version = 11 : i64} {
  func.func @_fused_kernel(%arg0: i32, %arg1: memref<1x64xf32, #tpu.memory_space<vmem>>, %arg2: memref<1x64xf32, #tpu.memory_space<vmem>>, %arg3: memref<256x64xf32, #tpu.memory_space<vmem>>, %arg4: memref<256x64xf32, #tpu.memory_space<vmem>>) attributes {dimension_semantics = [#tpu.dimension_semantics<arbitrary>], iteration_bounds = array<i64: 1>, scalar_prefetch = 0 : i64, scratch_operands = 0 : i64, tpu.core_type = #tpu.core_type<tc>, window_params = [{pipeline_mode = #tpu.pipeline_mode<synchronous>, transform_indices = @transform_0, window_bounds = array<i64: 1, 64>}, {pipeline_mode = #tpu.pipeline_mode<synchronous>, transform_indices = @transform_1, window_bounds = array<i64: 1, 64>}, {pipeline_mode = #tpu.pipeline_mode<synchronous>, transform_indices = @transform_2, window_bounds = array<i64: 256, 64>}, {pipeline_mode = #tpu.pipeline_mode<synchronous>, transform_indices = @transform_3, window_bounds = array<i64: 256, 64>}]} {
    %c0 = arith.constant 0 : index
    %c0_0 = arith.constant 0 : index
    %0 = vector.load %arg3[%c0, %c0_0] : memref<256x64xf32, #tpu.memory_space<vmem>>, vector<256x64xf32>
    %1 = arith.mulf %0, %0 : vector<256x64xf32>
    %cst = arith.constant dense<0.000000e+00> : vector<64xf32>
    %2 = vector.multi_reduction <add>, %1, %cst [0] : vector<256x64xf32> to vector<64xf32>
    %3 = vector.shape_cast %2 : vector<64xf32> to vector<1x64xf32>
    %4 = math.sqrt %3 : vector<1x64xf32>
    %cst_1 = arith.constant dense<0.000000e+00> : vector<1xf32>
    %5 = vector.multi_reduction <add>, %4, %cst_1 [1] : vector<1x64xf32> to vector<1xf32>
    %6 = vector.shape_cast %5 : vector<1xf32> to vector<1x1xf32>
    %cst_2 = arith.constant 6.400000e+01 : f32
    %7 = vector.broadcast %cst_2 : f32 to vector<1x1xf32>
    %8 = arith.divf %6, %7 : vector<1x1xf32>
    %cst_3 = arith.constant 9.99999997E-7 : f32
    %9 = vector.broadcast %cst_3 : f32 to vector<1x1xf32>
    %10 = arith.addf %8, %9 : vector<1x1xf32>
    %11 = vector.broadcast %10 : vector<1x1xf32> to vector<1x64xf32>
    %12 = arith.divf %4, %11 : vector<1x64xf32>
    %c0_4 = arith.constant 0 : index
    %c0_5 = arith.constant 0 : index
    %13 = vector.load %arg1[%c0_4, %c0_5] : memref<1x64xf32, #tpu.memory_space<vmem>>, vector<1x64xf32>
    %14 = vector.broadcast %12 : vector<1x64xf32> to vector<256x64xf32>
    %15 = arith.mulf %0, %14 : vector<256x64xf32>
    %16 = vector.broadcast %13 : vector<1x64xf32> to vector<256x64xf32>
    %17 = arith.mulf %16, %15 : vector<256x64xf32>
    %c0_6 = arith.constant 0 : index
    %c0_7 = arith.constant 0 : index
    %18 = vector.load %arg2[%c0_6, %c0_7] : memref<1x64xf32, #tpu.memory_space<vmem>>, vector<1x64xf32>
    %19 = vector.broadcast %18 : vector<1x64xf32> to vector<256x64xf32>
    %20 = arith.addf %17, %19 : vector<256x64xf32>
    %21 = arith.addf %20, %0 : vector<256x64xf32>
    %c0_8 = arith.constant 0 : index
    %c0_9 = arith.constant 0 : index
    %22 = vector.load %arg4[%c0_8, %c0_9] : memref<256x64xf32, #tpu.memory_space<vmem>>, vector<256x64xf32>
    tpu.vector_store %arg4[%c0_8, %c0_9], %21 {strides = array<i32>} : memref<256x64xf32, #tpu.memory_space<vmem>>, vector<256x64xf32>,
    return
  }
  func.func @transform_0(%arg0: i32) -> (i32, i32) {
    %c0_i32 = arith.constant 0 : i32
    %c0_i32_0 = arith.constant 0 : i32
    %c0_i32_1 = arith.constant 0 : i32
    return %c0_i32, %c0_i32_0 : i32, i32
  }
  func.func @transform_1(%arg0: i32) -> (i32, i32) {
    %c0_i32 = arith.constant 0 : i32
    %c0_i32_0 = arith.constant 0 : i32
    %c0_i32_1 = arith.constant 0 : i32
    return %c0_i32, %c0_i32_0 : i32, i32
  }
  func.func @transform_2(%arg0: i32) -> (i32, i32) {
    %c0_i32 = arith.constant 0 : i32
    %c0_i32_0 = arith.constant 0 : i32
    %c0_i32_1 = arith.constant 0 : i32
    return %c0_i32, %c0_i32_0 : i32, i32
  }
  func.func @transform_3(%arg0: i32) -> (i32, i32) {
    %c0_i32 = arith.constant 0 : i32
    %c0_i32_0 = arith.constant 0 : i32
    %c0_i32_1 = arith.constant 0 : i32
    return %c0_i32, %c0_i32_0 : i32, i32
  }
}

</mosaic_0001>

<bundles_post_ra>
// kernel: tpu_custom_call.1
= control target key start
LH: loop header
LB: loop body
LE: loop exit
PB: predicated region body
PF: predicated region fallthrough
CT: control target
= control target key end

     0   :  { %vm78_vm0 = vcmask 523264   ;;  %s822_s2 = inlined_call_operand.vmem [shape: f32[256,64], index: 2, kind: input, shape index: {}]   ;;  %s823_s0 = inlined_call_operand.vmem [shape: f32[1,64], index: 0, kind: input, shape index: {}]   ;;  %s824_s1 = inlined_call_operand.vmem [shape: f32[1,64], index: 1, kind: input, shape index: {}]   ;;  %s825_s3 = inlined_call_operand.vmem [shape: f32[256,64], index: 3, kind: output, shape index: {}]  }
   0x1   :  { %v370_v0 = vld [vmem:[%s822_s2] sm:$0xff]  ;;  %v375_v1 = vld [vmem:[%s822_s2 + $0x8] sm:$0xff]  ;;  %v380_v2 = vld [vmem:[%s822_s2 + $0x10] sm:$0xff] }
   0x2   :  { %v385_v3 = vld [vmem:[%s822_s2 + $0x18] sm:$0xff]  ;;  %v46_v4 = vmul.f32 %v370_v0, %v370_v0  ;;  %v47_v5 = vmul.f32 %v375_v1, %v375_v1  ;;  %v48_v6 = vmul.f32 %v380_v2, %v380_v2  ;;  %v396_v7 = vld [vmem:[%s822_s2 + $0x20] sm:$0xff]  ;;  %v402_v9 = vld [vmem:[%s822_s2 + $0x28] sm:$0xff] }
   0x3   :  { %v49_v10 = vmul.f32 %v385_v3, %v385_v3  ;;  %v410_v12 = vld [vmem:[%s822_s2 + $0x30] sm:$0xff]  ;;  %v50_v14 = vmul.f32 %v396_v7, %v396_v7  ;;  %v418_v16 = vld [vmem:[%s822_s2 + $0x38] sm:$0xff]  ;;  %v51_v17 = vmul.f32 %v402_v9, %v402_v9  ;;  %v428_v21 = vld [vmem:[%s822_s2 + $0x40] sm:$0xff] }
   0x4   :  { %v79_v8 = vsel %vm78_vm0, %v46_v4, 0.0  ;;  %v80_v11 = vsel %vm78_vm0, %v47_v5, 0.0  ;;  %v82_v15 = vsel %vm78_vm0, %v48_v6, 0.0  ;;  %v52_v19 = vmul.f32 %v410_v12, %v410_v12  ;;  %v436_v25 = vld [vmem:[%s822_s2 + $0x48] sm:$0xff]  ;;  %v445_v30 = vld [vmem:[%s822_s2 + $0x50] sm:$0xff]  ;;  %v453_v34 = vld [vmem:[%s822_s2 + $0x58] sm:$0xff] }
   0x5   :  { %v81_v13 = vadd.f32 %v80_v11, %v79_v8  ;;  %v84_v20 = vsel %vm78_vm0, %v49_v10, 0.0  ;;  %v53_v23 = vmul.f32 %v418_v16, %v418_v16  ;;  %v86_v24 = vsel %vm78_vm0, %v50_v14, 0.0  ;;  %848 = vst [vmem:[#allocation2_spill] sm:$0xff] %v445_v30  ;;  %849 = vst [vmem:[#allocation3_spill] sm:$0xff] %v453_v34  ;;  %v461_v38 = vld [vmem:[%s822_s2 + $0x60] sm:$0xff]  ;;  %v469_v42 = vld [vmem:[%s822_s2 + $0x68] sm:$0xff] }
   0x6   :  { %v88_v27 = vsel %vm78_vm0, %v51_v17, 0.0  ;;  %v54_v28 = vmul.f32 %v428_v21, %v428_v21  ;;  %v90_v29 = vsel %vm78_vm0, %v52_v19, 0.0  ;;  %v55_v32 = vmul.f32 %v436_v25, %v436_v25  ;;  %850 = vst [vmem:[#allocation4_spill] sm:$0xff] %v461_v38  ;;  %851 = vst [vmem:[#allocation5_spill] sm:$0xff] %v469_v42  ;;  %v477_v46 = vld [vmem:[%s822_s2 + $0x70] sm:$0xff]  ;;  %v485_v50 = vld [vmem:[%s822_s2 + $0x78] sm:$0xff] }
   0x7   :  { %v83_v18 = vadd.f32 %v82_v15, %v81_v13  ;;  %v92_v33 = vsel %vm78_vm0, %v53_v23, 0.0  ;;  %v56_v36 = vmul.f32 %v445_v30, %v445_v30  ;;  %v57_v40 = vmul.f32 %v453_v34, %v453_v34  ;;  %852 = vst [vmem:[#allocation6_spill] sm:$0xff] %v477_v46  ;;  %853 = vst [vmem:[#allocation7_spill] sm:$0xff] %v485_v50  ;;  %v493_v54 = vld [vmem:[%s822_s2 + $0x80] sm:$0xff]  ;;  %v501_v58 = vld [vmem:[%s822_s2 + $0x88] sm:$0xff] }
   0x8   :  { %v94_v37 = vsel %vm78_vm0, %v54_v28, 0.0  ;;  %v96_v41 = vsel %vm78_vm0, %v55_v32, 0.0  ;;  %v58_v44 = vmul.f32 %v461_v38, %v461_v38  ;;  %v59_v48 = vmul.f32 %v469_v42, %v469_v42  ;;  %854 = vst [vmem:[#allocation8_spill] sm:$0xff] %v493_v54  ;;  %855 = vst [vmem:[#allocation9_spill] sm:$0xff] %v501_v58  ;;  %v509_v62 = vld [vmem:[%s822_s2 + $0x90] sm:$0xff]  ;;  %v517_v6 = vld [vmem:[%s822_s2 + $0x98] sm:$0xff] }
   0x9   :  { %v85_v22 = vadd.f32 %v84_v20, %v83_v18  ;;  %v98_v45 = vsel %vm78_vm0, %v56_v36, 0.0  ;;  %v100_v49 = vsel %vm78_vm0, %v57_v40, 0.0  ;;  %v60_v52 = vmul.f32 %v477_v46, %v477_v46  ;;  %856 = vst [vmem:[#allocation10_spill] sm:$0xff] %v509_v62  ;;  %857 = vst [vmem:[#allocation11_spill] sm:$0xff] %v517_v6  ;;  %v525_v13 = vld [vmem:[%s822_s2 + $0xa0] sm:$0xff]  ;;  %v533_v18 = vld [vmem:[%s822_s2 + $0xa8] sm:$0xff] }
   0xa   :  { %v102_v53 = vsel %vm78_vm0, %v58_v44, 0.0  ;;  %v61_v56 = vmul.f32 %v485_v50, %v485_v50  ;;  %v104_v57 = vsel %vm78_vm0, %v59_v48, 0.0  ;;  %v62_v60 = vmul.f32 %v493_v54, %v493_v54  ;;  %858 = vst [vmem:[#allocation12_spill] sm:$0xff] %v525_v13  ;;  %859 = vst [vmem:[#allocation13_spill] sm:$0xff] %v533_v18  ;;  %v541_v23 = vld [vmem:[%s822_s2 + $0xb0] sm:$0xff]  ;;  %v549_v28 = vld [vmem:[%s822_s2 + $0xb8] sm:$0xff] }
   0xb   :  { %v87_v26 = vadd.f32 %v86_v24, %v85_v22  ;;  %v106_v61 = vsel %vm78_vm0, %v60_v52, 0.0  ;;  %v63_v4 = vmul.f32 %v501_v58, %v501_v58  ;;  %v64_v10 = vmul.f32 %v509_v62, %v509_v62  ;;  %860 = vst [vmem:[#allocation14_spill] sm:$0xff] %v541_v23  ;;  %861 = vst [vmem:[#allocation15_spill] sm:$0xff] %v549_v28  ;;  %v573_v44 = vld [vmem:[%s822_s2 + $0xd0] sm:$0xff] }
   0xc   :  { %v108_v5 = vsel %vm78_vm0, %v61_v56, 0.0  ;;  %v110_v11 = vsel %vm78_vm0, %v62_v60, 0.0  ;;  %v65_v15 = vmul.f32 %v517_v6, %v517_v6  ;;  %v66_v20 = vmul.f32 %v525_v13, %v525_v13  ;;  %864 = vst [vmem:[#allocation18_spill] sm:$0xff] %v573_v44  ;;  %v597_v60 = vld [vmem:[%s822_s2 + $0xe8] sm:$0xff] }
   0xd   :  { %v89_v31 = vadd.f32 %v88_v27, %v87_v26  ;;  %v112_v17 = vsel %vm78_vm0, %v63_v4, 0.0  ;;  %v114_v22 = vsel %vm78_vm0, %v64_v10, 0.0  ;;  %v67_v26 = vmul.f32 %v533_v18, %v533_v18  ;;  %867 = vst [vmem:[#allocation21_spill] sm:$0xff] %v597_v60 }
   0xe   :  { %v116_v27 = vsel %vm78_vm0, %v65_v15, 0.0  ;;  %v118_v32 = vsel %vm78_vm0, %v66_v20, 0.0  ;;  %v69_v36 = vmul.f32 %v549_v28, %v549_v28  ;;  %v72_v52 = vmul.f32 %v573_v44, %v573_v44 }
   0xf   :  { %v91_v35 = vadd.f32 %v90_v29, %v89_v31  ;;  %v68_v31 = vmul.f32 %v541_v23, %v541_v23  ;;  %v75_v10 = vmul.f32 %v597_v60, %v597_v60 }
  0x10   :  { %v124_v48 = vsel %vm78_vm0, %v69_v36, 0.0  ;;  %v130_v4 = vsel %vm78_vm0, %v72_v52, 0.0 }
  0x11   :  { %v93_v39 = vadd.f32 %v92_v33, %v91_v35  ;;  %v557_v33 = vld [vmem:[%s822_s2 + $0xc0] sm:$0xff] }
  0x12   :  { %862 = vst [vmem:[#allocation16_spill] sm:$0xff] %v557_v33 }
  0x13   :  { %v95_v43 = vadd.f32 %v94_v37, %v93_v39  ;;  %v120_v37 = vsel %vm78_vm0, %v67_v26, 0.0  ;;  %v565_v39 = vld [vmem:[%s822_s2 + $0xc8] sm:$0xff] }
  0x14   :  { %863 = vst [vmem:[#allocation17_spill] sm:$0xff] %v565_v39 }
  0x15   :  { %v97_v47 = vadd.f32 %v96_v41, %v95_v43  ;;  %v70_v41 = vmul.f32 %v557_v33, %v557_v33  ;;  %v122_v43 = vsel %vm78_vm0, %v68_v31, 0.0 }
  0x17   :  { %v99_v51 = vadd.f32 %v98_v45, %v97_v47  ;;  %v71_v47 = vmul.f32 %v565_v39, %v565_v39 }
  0x19   :  { %v101_v55 = vadd.f32 %v100_v49, %v99_v51  ;;  %v581_v49 = vld [vmem:[%s822_s2 + $0xd8] sm:$0xff] }
  0x1a   :  { %865 = vst [vmem:[#allocation19_spill] sm:$0xff] %v581_v49 }
  0x1b   :  { %v103_v59 = vadd.f32 %v102_v53, %v101_v55  ;;  %v126_v53 = vsel %vm78_vm0, %v70_v41, 0.0  ;;  %v589_v55 = vld [vmem:[%s822_s2 + $0xe0] sm:$0xff] }
  0x1c   :  { %866 = vst [vmem:[#allocation20_spill] sm:$0xff] %v589_v55 }
  0x1d   :  { %v105_v63 = vadd.f32 %v104_v57, %v103_v59  ;;  %v73_v57 = vmul.f32 %v581_v49, %v581_v49  ;;  %v128_v59 = vsel %vm78_vm0, %v71_v47, 0.0 }
  0x1f   :  { %v107_v8 = vadd.f32 %v106_v61, %v105_v63  ;;  %v74_v63 = vmul.f32 %v589_v55, %v589_v55 }
  0x21   :  { %v109_v14 = vadd.f32 %v108_v5, %v107_v8  ;;  %v605_v5 = vld [vmem:[%s822_s2 + $0xf0] sm:$0xff] }
  0x22   :  { %868 = vst [vmem:[#allocation22_spill] sm:$0xff] %v605_v5 }
  0x23   :  { %v111_v19 = vadd.f32 %v110_v11, %v109_v14  ;;  %v132_v11 = vsel %vm78_vm0, %v73_v57, 0.0  ;;  %v613_v14 = vld [vmem:[%s822_s2 + $0xf8] sm:$0xff] }
  0x24   :  { %869 = vst [vmem:[#allocation23_spill] sm:$0xff] %v613_v14 }
  0x25   :  { %v113_v24 = vadd.f32 %v112_v17, %v111_v19  ;;  %v76_v17 = vmul.f32 %v605_v5, %v605_v5  ;;  %v134_v19 = vsel %vm78_vm0, %v74_v63, 0.0 }
  0x27   :  { %v115_v29 = vadd.f32 %v114_v22, %v113_v24  ;;  %v77_v22 = vmul.f32 %v613_v14, %v613_v14  ;;  %v136_v24 = vsel %vm78_vm0, %v75_v10, 0.0 }
  0x29   :  { %v117_v35 = vadd.f32 %v116_v27, %v115_v29  ;;  %v138_v27 = vsel %vm78_vm0, %v76_v17, 0.0  ;;  %v140_v31 = vsel %vm78_vm0, %v77_v22, 0.0 }
  0x2b   :  { %v119_v40 = vadd.f32 %v118_v32, %v117_v35 }
  0x2d   :  { %v121_v45 = vadd.f32 %v120_v37, %v119_v40 }
  0x2f   :  { %v123_v51 = vadd.f32 %v122_v43, %v121_v45 }
  0x31   :  { %v125_v56 = vadd.f32 %v124_v48, %v123_v51 }
  0x33   :  { %v127_v61 = vadd.f32 %v126_v53, %v125_v56 }
  0x35   :  { %v129_v8 = vadd.f32 %v128_v59, %v127_v61 }
  0x37   :  { %v131_v15 = vadd.f32 %v130_v4, %v129_v8 }
  0x39   :  { %v133_v20 = vadd.f32 %v132_v11, %v131_v15 }
  0x3b   :  { %v135_v26 = vadd.f32 %v134_v19, %v133_v20 }
  0x3d   :  { %v137_v29 = vadd.f32 %v136_v24, %v135_v26 }
  0x3f   :  { %v139_v32 = vadd.f32 %v138_v27, %v137_v29 }
  0x41   :  { %v141_v35 = vadd.f32 %v140_v31, %v139_v32 }
  0x43   :  { %v142_v36 = vrot.slane %v141_v35, 4 }
  0x45   :  { %v143_v37 = vadd.f32 %v142_v36, %v141_v35 }
  0x47   :  { %v144_v40 = vrot.slane %v143_v37, 2 }
  0x49   :  { %v145_v41 = vadd.f32 %v144_v40, %v143_v37 }
  0x4b   :  { %v146_v43 = vrot.slane %v145_v41, 1 }
  0x4d   :  { %v147_v45 = vadd.f32 %v146_v43, %v145_v41 }
  0x4f   :  { %343 = vrsqrt.f32 %v147_v45  ;;  %vm150_vm1 = vcmp.eq.f32.partialorder %v147_v45, inf  ;;  %v153_v48 = vand.u32 2147483648, %v147_v45  ;;  %vm152_vm2 = vcmp.eq.f32.partialorder %v147_v45, 0.0 }
  0x59   :  { %v344_v47 = vpop.eup %343 }
  0x5a   :  { %v149_v51 = vmul.f32 %v344_v47, %v147_v45 }
  0x5c   :  { %v151_v52 = vsel %vm150_vm1, %v147_v45, %v149_v51  ;;  %v341_v45 = vld [vmem:[%s823_s0] ss:$0 sm:$0xff] }
  0x5d   :  { %v154_v53 = vsel %vm152_vm2, %v153_v48, %v151_v52 }
  0x5e   :  { %v155_v56 = vsel %vm78_vm0, %v154_v53, 0.0 }
  0x5f   :  { %156 = vadd.xlane.f32.xlu0 %v155_v56 }
  0xec   :  { %v157_v57 = vpop.xlane.xlu0 %156 }
  0xed   :  { %v159_v59 = vmul.f32 0.015625, %v157_v57 }
  0xef   :  { %v160_v61 = vadd.f32 1e-06, %v159_v59 }
  0xf1   :  { %345 = vrcp.f32 %v160_v61 }
  0xfb   :  { %v346_v63 = vpop.eup %345 }
  0xfc   :  { %v162_v4 = vmul.f32 %v346_v63, %v154_v53 }
  0xfe   :  { %v164_v8 = vmul.f32 %v162_v4, %v370_v0  ;;  %v165_v10 = vmul.f32 %v162_v4, %v375_v1  ;;  %v166_v11 = vmul.f32 %v162_v4, %v380_v2  ;;  %v167_v15 = vmul.f32 %v162_v4, %v385_v3 }
  0xff   :  { %v168_v17 = vmul.f32 %v162_v4, %v396_v7  ;;  %v169_v19 = vmul.f32 %v162_v4, %v402_v9  ;;  %v170_v20 = vmul.f32 %v162_v4, %v410_v12  ;;  %v171_v22 = vmul.f32 %v162_v4, %v418_v16 }
 0x100   :  { %v172_v24 = vmul.f32 %v162_v4, %v428_v21  ;;  %v173_v26 = vmul.f32 %v162_v4, %v436_v25  ;;  %v174_v27 = vmul.f32 %v162_v4, %v445_v30  ;;  %v175_v29 = vmul.f32 %v162_v4, %v453_v34 }
 0x101   :  { %v176_v31 = vmul.f32 %v162_v4, %v461_v38  ;;  %v177_v32 = vmul.f32 %v162_v4, %v469_v42  ;;  %v178_v35 = vmul.f32 %v162_v4, %v477_v46  ;;  %v179_v36 = vmul.f32 %v162_v4, %v485_v50 }
 0x102   :  { %v180_v37 = vmul.f32 %v162_v4, %v493_v54  ;;  %v181_v40 = vmul.f32 %v162_v4, %v501_v58  ;;  %v182_v41 = vmul.f32 %v162_v4, %v509_v62  ;;  %v183_v43 = vmul.f32 %v162_v4, %v517_v6 }
 0x103   :  { %v184_v47 = vmul.f32 %v162_v4, %v525_v13  ;;  %v185_v48 = vmul.f32 %v162_v4, %v533_v18  ;;  %v186_v51 = vmul.f32 %v162_v4, %v541_v23  ;;  %v187_v52 = vmul.f32 %v162_v4, %v549_v28 }
 0x104   :  { %v188_v53 = vmul.f32 %v162_v4, %v557_v33  ;;  %v189_v56 = vmul.f32 %v162_v4, %v565_v39  ;;  %v190_v57 = vmul.f32 %v162_v4, %v573_v44  ;;  %v191_v59 = vmul.f32 %v162_v4, %v581_v49 }
 0x105   :  { %v192_v61 = vmul.f32 %v162_v4, %v589_v55  ;;  %v193_v63 = vmul.f32 %v162_v4, %v597_v60  ;;  %v194_v13 = vmul.f32 %v162_v4, %v605_v5  ;;  %v195_v18 = vmul.f32 %v162_v4, %v613_v14 }
 0x106   :  { %v202_v6 = vmul.f32 %v341_v45, %v164_v8  ;;  %v203_v23 = vmul.f32 %v341_v45, %v165_v10  ;;  %v204_v62 = vmul.f32 %v341_v45, %v166_v11  ;;  %v205_v28 = vmul.f32 %v341_v45, %v167_v15 }
 0x107   :  { %v206_v58 = vmul.f32 %v341_v45, %v168_v17  ;;  %v207_v33 = vmul.f32 %v341_v45, %v169_v19  ;;  %v208_v54 = vmul.f32 %v341_v45, %v170_v20  ;;  %v209_v39 = vmul.f32 %v341_v45, %v171_v22  ;;  %v342_v17 = vld [vmem:[%s824_s1] ss:$0 sm:$0xff] }
 0x108   :  { %v210_v50 = vmul.f32 %v341_v45, %v172_v24  ;;  %v211_v44 = vmul.f32 %v341_v45, %v173_v26  ;;  %v212_v46 = vmul.f32 %v341_v45, %v174_v27  ;;  %v213_v49 = vmul.f32 %v341_v45, %v175_v29 }
 0x109   :  { %v214_v42 = vmul.f32 %v341_v45, %v176_v31  ;;  %v215_v55 = vmul.f32 %v341_v45, %v177_v32  ;;  %v216_v38 = vmul.f32 %v341_v45, %v178_v35  ;;  %v217_v60 = vmul.f32 %v341_v45, %v179_v36 }
 0x10a   :  { %v218_v34 = vmul.f32 %v341_v45, %v180_v37  ;;  %v219_v5 = vmul.f32 %v341_v45, %v181_v40  ;;  %v220_v30 = vmul.f32 %v341_v45, %v182_v41  ;;  %v221_v4 = vmul.f32 %v341_v45, %v183_v43 }
 0x10b   :  { %v222_v8 = vmul.f32 %v341_v45, %v184_v47  ;;  %v223_v10 = vmul.f32 %v341_v45, %v185_v48  ;;  %v224_v11 = vmul.f32 %v341_v45, %v186_v51  ;;  %v225_v15 = vmul.f32 %v341_v45, %v187_v52 }
 0x10c   :  { %v226_v19 = vmul.f32 %v341_v45, %v188_v53  ;;  %v227_v20 = vmul.f32 %v341_v45, %v189_v56  ;;  %v228_v22 = vmul.f32 %v341_v45, %v190_v57  ;;  %v229_v24 = vmul.f32 %v341_v45, %v191_v59 }
 0x10d   :  { %v230_v26 = vmul.f32 %v341_v45, %v192_v61  ;;  %v231_v27 = vmul.f32 %v341_v45, %v193_v63  ;;  %v232_v29 = vmul.f32 %v341_v45, %v194_v13  ;;  %v233_v31 = vmul.f32 %v341_v45, %v195_v18 }
 0x10e   :  { %v241_v32 = vadd.f32 %v342_v17, %v202_v6  ;;  %v242_v35 = vadd.f32 %v342_v17, %v203_v23  ;;  %v243_v36 = vadd.f32 %v342_v17, %v204_v62  ;;  %v244_v37 = vadd.f32 %v342_v17, %v205_v28 }
 0x10f   :  { %v245_v40 = vadd.f32 %v342_v17, %v206_v58  ;;  %v246_v41 = vadd.f32 %v342_v17, %v207_v33  ;;  %v247_v43 = vadd.f32 %v342_v17, %v208_v54  ;;  %v248_v47 = vadd.f32 %v342_v17, %v209_v39 }
 0x110   :  { %v249_v48 = vadd.f32 %v342_v17, %v210_v50  ;;  %v250_v51 = vadd.f32 %v342_v17, %v211_v44  ;;  %v251_v52 = vadd.f32 %v342_v17, %v212_v46  ;;  %v252_v14 = vadd.f32 %v342_v17, %v213_v49 }
 0x111   :  { %v253_v53 = vadd.f32 %v342_v17, %v214_v42  ;;  %v254_v56 = vadd.f32 %v342_v17, %v215_v55  ;;  %v255_v57 = vadd.f32 %v342_v17, %v216_v38  ;;  %v256_v59 = vadd.f32 %v342_v17, %v217_v60 }
 0x112   :  { %v257_v61 = vadd.f32 %v342_v17, %v218_v34  ;;  %v258_v63 = vadd.f32 %v342_v17, %v219_v5  ;;  %v259_v13 = vadd.f32 %v342_v17, %v220_v30  ;;  %v260_v18 = vadd.f32 %v342_v17, %v221_v4 }
 0x113   :  { %v261_v6 = vadd.f32 %v342_v17, %v222_v8  ;;  %v262_v23 = vadd.f32 %v342_v17, %v223_v10  ;;  %v263_v62 = vadd.f32 %v342_v17, %v224_v11  ;;  %v264_v28 = vadd.f32 %v342_v17, %v225_v15  ;;  %v870_v10 = vld [vmem:[#allocation2_spill] sm:$0xff]  ;;  %v871_v11 = vld [vmem:[#allocation3_spill] sm:$0xff] }
 0x114   :  { %v265_v58 = vadd.f32 %v342_v17, %v226_v19  ;;  %v266_v33 = vadd.f32 %v342_v17, %v227_v20  ;;  %v267_v54 = vadd.f32 %v342_v17, %v228_v22  ;;  %v268_v39 = vadd.f32 %v342_v17, %v229_v24  ;;  %v878_v20 = vld [vmem:[#allocation10_spill] sm:$0xff]  ;;  %v879_v24 = vld [vmem:[#allocation11_spill] sm:$0xff] }
 0x115   :  { %v269_v50 = vadd.f32 %v342_v17, %v230_v26  ;;  %v270_v44 = vadd.f32 %v342_v17, %v231_v27  ;;  %v271_v46 = vadd.f32 %v342_v17, %v232_v29  ;;  %v272_v49 = vadd.f32 %v342_v17, %v233_v31  ;;  %v877_v17 = vld [vmem:[#allocation9_spill] sm:$0xff]  ;;  %v880_v27 = vld [vmem:[#allocation12_spill] sm:$0xff] }
 0x116   :  { %v273_v42 = vadd.f32 %v241_v32, %v370_v0  ;;  %v274_v38 = vadd.f32 %v242_v35, %v375_v1  ;;  %v275_v34 = vadd.f32 %v243_v36, %v380_v2  ;;  %v276_v30 = vadd.f32 %v244_v37, %v385_v3  ;;  %v872_v2 = vld [vmem:[#allocation4_spill] sm:$0xff]  ;;  %v881_v31 = vld [vmem:[#allocation13_spill] sm:$0xff]  ;;  %v882_v35 = vld [vmem:[#allocation14_spill] sm:$0xff] }
 0x117   :  { %v277_v55 = vadd.f32 %v245_v40, %v396_v7  ;;  %v278_v60 = vadd.f32 %v246_v41, %v402_v9  ;;  %v279_v5 = vadd.f32 %v247_v43, %v410_v12  ;;  %v280_v45 = vadd.f32 %v248_v47, %v418_v16  ;;  %v873_v7 = vld [vmem:[#allocation5_spill] sm:$0xff]  ;;  %v874_v12 = vld [vmem:[#allocation6_spill] sm:$0xff]  ;;  %v883_v37 = vld [vmem:[#allocation15_spill] sm:$0xff] }
 0x118   :  { %v281_v4 = vadd.f32 %v249_v48, %v428_v21  ;;  %v282_v8 = vadd.f32 %v250_v51, %v436_v25  ;;  %v283_v0 = vadd.f32 %v251_v52, %v870_v10  ;;  %v284_v1 = vadd.f32 %v252_v14, %v871_v11  ;;  %305 = vst.msk [vmem:[%s825_s3] sm:$0xff] %vm78_vm0, %v273_v42  ;;  %v875_v21 = vld [vmem:[#allocation7_spill] sm:$0xff]  ;;  %v876_v14 = vld [vmem:[#allocation8_spill] sm:$0xff]  ;;  %v885_v47 = vld [vmem:[#allocation17_spill] sm:$0xff] }
 0x119   :  { %306 = vst.msk [vmem:[%s825_s3 + $0x8] sm:$0xff] %vm78_vm0, %v274_v38  ;;  %307 = vst.msk [vmem:[%s825_s3 + $0x10] sm:$0xff] %vm78_vm0, %v275_v34  ;;  %v285_v3 = vadd.f32 %v253_v53, %v872_v2  ;;  %v286_v9 = vadd.f32 %v254_v56, %v873_v7  ;;  %v287_v16 = vadd.f32 %v255_v57, %v874_v12  ;;  %v884_v41 = vld [vmem:[#allocation16_spill] sm:$0xff]  ;;  %v886_v51 = vld [vmem:[#allocation18_spill] sm:$0xff] }
 0x11a   :  { %308 = vst.msk [vmem:[%s825_s3 + $0x18] sm:$0xff] %vm78_vm0, %v276_v30  ;;  %v288_v25 = vadd.f32 %v256_v59, %v875_v21  ;;  %309 = vst.msk [vmem:[%s825_s3 + $0x20] sm:$0xff] %vm78_vm0, %v277_v55  ;;  %v289_v15 = vadd.f32 %v257_v61, %v876_v14  ;;  %v290_v19 = vadd.f32 %v258_v63, %v877_v17  ;;  %v887_v53 = vld [vmem:[#allocation19_spill] sm:$0xff]  ;;  %v888_v57 = vld [vmem:[#allocation20_spill] sm:$0xff] }
 0x11b   :  { %310 = vst.msk [vmem:[%s825_s3 + $0x28] sm:$0xff] %vm78_vm0, %v278_v60  ;;  %311 = vst.msk [vmem:[%s825_s3 + $0x30] sm:$0xff] %vm78_vm0, %v279_v5  ;;  %v291_v22 = vadd.f32 %v259_v13, %v878_v20  ;;  %v292_v26 = vadd.f32 %v260_v18, %v879_v24  ;;  %v293_v29 = vadd.f32 %v261_v6, %v880_v27  ;;  %v889_v61 = vld [vmem:[#allocation21_spill] sm:$0xff]  ;;  %v890_v13 = vld [vmem:[#allocation22_spill] sm:$0xff] }
 0x11c   :  { %312 = vst.msk [vmem:[%s825_s3 + $0x38] sm:$0xff] %vm78_vm0, %v280_v45  ;;  %313 = vst.msk [vmem:[%s825_s3 + $0x40] sm:$0xff] %vm78_vm0, %v281_v4  ;;  %v294_v32 = vadd.f32 %v262_v23, %v881_v31  ;;  %v295_v36 = vadd.f32 %v263_v62, %v882_v35  ;;  %v296_v40 = vadd.f32 %v264_v28, %v883_v37  ;;  %v891_v6 = vld [vmem:[#allocation23_spill] sm:$0xff] }
 0x11d   :  { %314 = vst.msk [vmem:[%s825_s3 + $0x48] sm:$0xff] %vm78_vm0, %v282_v8  ;;  %315 = vst.msk [vmem:[%s825_s3 + $0x50] sm:$0xff] %vm78_vm0, %v283_v0  ;;  %v297_v43 = vadd.f32 %v265_v58, %v884_v41  ;;  %v298_v48 = vadd.f32 %v266_v33, %v885_v47  ;;  %v299_v52 = vadd.f32 %v267_v54, %v886_v51 }
 0x11e   :  { %316 = vst.msk [vmem:[%s825_s3 + $0x58] sm:$0xff] %vm78_vm0, %v284_v1  ;;  %317 = vst.msk [vmem:[%s825_s3 + $0x60] sm:$0xff] %vm78_vm0, %v285_v3  ;;  %v300_v56 = vadd.f32 %v268_v39, %v887_v53  ;;  %v301_v59 = vadd.f32 %v269_v50, %v888_v57  ;;  %v302_v63 = vadd.f32 %v270_v44, %v889_v61 }
 0x11f   :  { %318 = vst.msk [vmem:[%s825_s3 + $0x68] sm:$0xff] %vm78_vm0, %v286_v9  ;;  %319 = vst.msk [vmem:[%s825_s3 + $0x70] sm:$0xff] %vm78_vm0, %v287_v16  ;;  %v303_v18 = vadd.f32 %v271_v46, %v890_v13  ;;  %v304_v23 = vadd.f32 %v272_v49, %v891_v6 }
 0x120   :  { %320 = vst.msk [vmem:[%s825_s3 + $0x78] sm:$0xff] %vm78_vm0, %v288_v25  ;;  %321 = vst.msk [vmem:[%s825_s3 + $0x80] sm:$0xff] %vm78_vm0, %v289_v15 }
 0x121   :  { %322 = vst.msk [vmem:[%s825_s3 + $0x88] sm:$0xff] %vm78_vm0, %v290_v19  ;;  %323 = vst.msk [vmem:[%s825_s3 + $0x90] sm:$0xff] %vm78_vm0, %v291_v22 }
 0x122   :  { %324 = vst.msk [vmem:[%s825_s3 + $0x98] sm:$0xff] %vm78_vm0, %v292_v26  ;;  %325 = vst.msk [vmem:[%s825_s3 + $0xa0] sm:$0xff] %vm78_vm0, %v293_v29 }
 0x123   :  { %326 = vst.msk [vmem:[%s825_s3 + $0xa8] sm:$0xff] %vm78_vm0, %v294_v32  ;;  %327 = vst.msk [vmem:[%s825_s3 + $0xb0] sm:$0xff] %vm78_vm0, %v295_v36 }
 0x124   :  { %328 = vst.msk [vmem:[%s825_s3 + $0xb8] sm:$0xff] %vm78_vm0, %v296_v40  ;;  %329 = vst.msk [vmem:[%s825_s3 + $0xc0] sm:$0xff] %vm78_vm0, %v297_v43 }
 0x125   :  { %330 = vst.msk [vmem:[%s825_s3 + $0xc8] sm:$0xff] %vm78_vm0, %v298_v48  ;;  %331 = vst.msk [vmem:[%s825_s3 + $0xd0] sm:$0xff] %vm78_vm0, %v299_v52 }
 0x126   :  { %332 = vst.msk [vmem:[%s825_s3 + $0xd8] sm:$0xff] %vm78_vm0, %v300_v56  ;;  %333 = vst.msk [vmem:[%s825_s3 + $0xe0] sm:$0xff] %vm78_vm0, %v301_v59 }
 0x127   :  { %334 = vst.msk [vmem:[%s825_s3 + $0xe8] sm:$0xff] %vm78_vm0, %v302_v63  ;;  %335 = vst.msk [vmem:[%s825_s3 + $0xf0] sm:$0xff] %vm78_vm0, %v303_v18 }
 0x128   :  { %336 = vst.msk [vmem:[%s825_s3 + $0xf8] sm:$0xff] %vm78_vm0, %v304_v23 }

</bundles_post_ra>
